<compile_context>
chip_gen: v7x
topology: tpu7x:2x2x1
jax: 0.10.0
libtpu: 0.0.40
codegen_flags: <defaults>
</compile_context>

<pallas_src>
import jax
import jax.numpy as jnp
from jax.experimental import pallas as pl
from jax.experimental.pallas import tpu as pltpu

LANE = 128           # TPU lane width: all in-kernel matmuls / stores are lane-dense
LEAKY_SLOPE = 0.01   # nn.LeakyReLU() default negative slope


def _round_up(x, m):
    return (x + m - 1) // m * m


# ----------------------------------------------------------------------------- params
def init_params(key, node_dim, edge_dim, hidden_dim, conv_layers, linear_layers):
    """Raw (un-packed) weights mirroring the PyTorch module's eval-mode path."""
    assert hidden_dim % (2 ** linear_layers) == 0, \
        "hidden_dim must be divisible by 2**linear_layers"
    dims = [hidden_dim // (2 ** i) for i in range(linear_layers + 1)]
    ks = iter(jax.random.split(key, 64))

    def glorot(k, shape):
        return (jax.random.normal(k, shape, jnp.float32)
                / jnp.sqrt(jnp.float32(shape[0])))

    params = {
        "W_embed_r": glorot(next(ks), (node_dim, hidden_dim)),
        # TODO(synk): W_embed_i / W_embed_e (i_node / r_edge embeddings) feed the
        # real ISATconvolution_PM input path; omitted because the stand-in conv
        # does not consume them (edge_dim is therefore unused here).
        "conv_W_P": [glorot(next(ks), (hidden_dim, hidden_dim))
                     for _ in range(conv_layers)],
        "conv_W_M": [glorot(next(ks), (hidden_dim, hidden_dim))
                     for _ in range(conv_layers)],
        "linears_W": [glorot(next(ks), (dims[i], dims[i + 1]))
                      for i in range(linear_layers)],
        "linears_b": [jnp.zeros((dims[i + 1],), jnp.float32)
                      for i in range(linear_layers)],
        "out_W": glorot(next(ks), (dims[-1], 1)),
        "out_b": jnp.zeros((1,), jnp.float32),   # cancels exactly in h_P - h_M
    }
    return params, dims


# ----------------------------------------------------------------------------- slab
def pack_param_slab(params, *, node_dim, hidden_dim, conv_layers, linear_layers):
    """Pack every parameter into one [rows, 128] f32 slab (single DMA).

    Layout (each block 8-sublane aligned, 128 lanes wide):
      embed   : [node_dim_pad, 128]  W_embed_r in lanes 0:H
      conv0   : [128, 128]           rows 0:H = [W_P0 | W_M0]   (layer-0 dedup fold)
      conv l  : [128, 128]           top-left [2H, 2H] = blockdiag(W_Pl, W_Ml)
      lin  l  : [128, 128]           top-left blockdiag(W_l, W_l)  (shared P/M head)
      bias    : [pad(n_lin), 128]    row l = [b_l | b_l | 0...]
      out     : [128, 128]           rows 0:d = out_W, rows d:2d = -out_W, all cols
    """
    H = hidden_dim
    assert 2 * H <= LANE, \
        "stacked P/M lanes must fit one 128-lane vreg"  # TODO(synk): split branches otherwise
    dims = [H // (2 ** i) for i in range(linear_layers + 1)]
    last_dim = dims[-1]
    node_dim_pad = _round_up(node_dim, 8)

    blocks, offsets = [], {}
    row = 0

    def add(name, block, rows):
        nonlocal row
        assert rows % 8 == 0 and rows >= block.shape[0] and block.shape[1] <= LANE
        padded = jnp.zeros((rows, LANE), jnp.float32)
        padded = padded.at[:block.shape[0], :block.shape[1]].set(
            block.astype(jnp.float32))
        offsets[name] = (row, rows)
        blocks.append(padded)
        row += rows

    # embedding_rnode_lin (bias=False)
    add("embed", params["W_embed_r"], node_dim_pad)

    # conv layer 0: adjacency dedup -> duplication folded into [H, 2H] weight
    w0 = jnp.concatenate([params["conv_W_P"][0], params["conv_W_M"][0]], axis=1)
    add("conv0", w0, LANE)

    # conv layers 1..L-1: block-diag(W_P, W_M)
    for l in range(1, conv_layers):
        bd = jnp.zeros((2 * H, 2 * H), jnp.float32)
        bd = bd.at[:H, :H].set(params["conv_W_P"][l])
        bd = bd.at[H:, H:].set(params["conv_W_M"][l])
        add(f"conv{l}", bd, LANE)

    # Linears head (weights shared between the P and M branches)
    for l in range(linear_layers):
        d_in, d_out = dims[l], dims[l + 1]
        w = params["linears_W"][l]
        bd = jnp.zeros((2 * d_in, 2 * d_out), jnp.float32)
        bd = bd.at[:d_in, :d_out].set(w)
        bd = bd.at[d_in:, d_out:].set(w)
        add(f"lin{l}", bd, LANE)

    bias_block = jnp.zeros((linear_layers, LANE), jnp.float32)
    for l in range(linear_layers):
        d_out = dims[l + 1]
        b = params["linears_b"][l]
        bias_block = bias_block.at[l, :d_out].set(b)
        bias_block = bias_block.at[l, d_out:2 * d_out].set(b)
    add("bias", bias_block, _round_up(max(linear_layers, 1), 8))

    # out_linear folded with the final (h_P - h_M); out_b cancels exactly.
    ow = params["out_W"][:, 0]
    col = jnp.concatenate([ow, -ow], axis=0)                   # [2*last_dim]
    add("out", jnp.tile(col[:, None], (1, LANE)), LANE)

    slab = jnp.concatenate(blocks, axis=0)                     # [rows_total, 128]
    return slab, offsets


# ----------------------------------------------------------------------------- kernel
def _make_fused_kernel(offsets, *, conv_layers, linear_layers):

    def kernel(r_node_ref, adj_ref, pool_ref, slab_ref, o_ref):
        def block(name):
            r0, nrows = offsets[name]
            return slab_ref[r0:r0 + nrows, :]                  # static, aligned slice

        adj = adj_ref[...]

        # ---- embedding_rnode_lin (Linear, bias=False); lanes 0:H live ----
        x = jnp.dot(r_node_ref[...], block("embed"),
                    preferred_element_type=jnp.float32)        # [N, 128]

        # ---- ISATconvolution_PM stand-in ---------------------------------
        # Layer 0: adjacency contraction done ONCE on the shared features; the
        # P/M duplication is folded into the layer-0 weight ([W_P | W_M]).
        m = jnp.dot(adj, x, preferred_element_type=jnp.float32)
        y = jnp.dot(m, block("conv0"), preferred_element_type=jnp.float32)
        xs = jnp.where(y > 0.0, y, LEAKY_SLOPE * y)            # lanes 0:2H live

        for l in range(1, conv_layers):
            m = jnp.dot(adj, xs, preferred_element_type=jnp.float32)
            y = jnp.dot(m, block(f"conv{l}"), preferred_element_type=jnp.float32)
            xs = jnp.where(y > 0.0, y, LEAKY_SLOPE * y)

        # ---- SumPooling: per-graph segment-sum as one small matmul --------
        h = jnp.dot(pool_ref[...], xs,
                    preferred_element_type=jnp.float32)        # [B_pad, 128]

        # ---- Linears (shared weights, stacked P/M lanes) + folded out head
        biases = block("bias")                                 # [pad(n_lin), 128]
        for l in range(linear_layers):
            z = jnp.dot(h, block(f"lin{l}"), preferred_element_type=jnp.float32)
            h = jnp.maximum(z + biases[l], 0.0)

        # out_linear + (h_P - h_M) in one lane-dense matmul: every column of
        # the result already equals h_P - h_M -> direct lane-dense store.
        o_ref[...] = jnp.dot(h, block("out"), preferred_element_type=jnp.float32)

    return kernel


# ----------------------------------------------------------------------------- wrapper
def network_forward(r_node, adj, pool_mat_padded, slab, offsets, *,
                    conv_layers, linear_layers, batch_size):
    """Eval-mode forward (dropout / Bi_Dropout are identity).  Returns [B, 1]."""
    b_pad = pool_mat_padded.shape[0]
    node_dim = r_node.shape[1]
    node_dim_pad = _round_up(node_dim, 8)
    if node_dim_pad != node_dim:
        r_node = jnp.pad(r_node, ((0, 0), (0, node_dim_pad - node_dim)))

    kern = _make_fused_kernel(offsets, conv_layers=conv_layers,
                              linear_layers=linear_layers)
    vmem = pl.BlockSpec(memory_space=pltpu.MemorySpace.VMEM)
    slab_out = pl.pallas_call(
        kern,
        out_shape=jax.ShapeDtypeStruct((b_pad, LANE), jnp.float32),
        in_specs=[vmem] * 4,
        out_specs=vmem,
    )(r_node.astype(jnp.float32), adj.astype(jnp.float32),
      pool_mat_padded.astype(jnp.float32), slab)
    return slab_out[:batch_size, 0:1]


# ----------------------------------------------------------------------------- reference
def reference_forward(params, r_node, adj, seg_ids, batch_size,
                      conv_layers, linear_layers):
    """Pure-JAX reference of the same (stand-in) forward, for validation."""
    x = r_node @ params["W_embed_r"]
    xp = xm = x
    for l in range(conv_layers):
        yp = (adj @ xp) @ params["conv_W_P"][l]
        ym = (adj @ xm) @ params["conv_W_M"][l]
        xp = jnp.where(yp > 0.0, yp, LEAKY_SLOPE * yp)
        xm = jnp.where(ym > 0.0, ym, LEAKY_SLOPE * ym)
    hp = jax.ops.segment_sum(xp, seg_ids, num_segments=batch_size)
    hm = jax.ops.segment_sum(xm, seg_ids, num_segments=batch_size)
    for l in range(linear_layers):
        hp = jnp.maximum(hp @ params["linears_W"][l] + params["linears_b"][l], 0.0)
        hm = jnp.maximum(hm @ params["linears_W"][l] + params["linears_b"][l], 0.0)
    op = hp @ params["out_W"] + params["out_b"]
    om = hm @ params["out_W"] + params["out_b"]
    return op - om


# ----------------------------------------------------------------------------- driver
if __name__ == "__main__":
    key = jax.random.PRNGKey(0)
    k_param, k_rn, k_adj = jax.random.split(key, 3)

    # Small config consistent with the module.
    node_dim, edge_dim, hidden_dim = 16, 8, 32
    conv_layers, linear_layers = 2, 4
    B, nodes_per_graph, n_edges = 2, 8, 20
    N_r = B * nodes_per_graph
    B_PAD = 8  # sublane-aligned batch padding for the lane-dense output slab

    params, _ = init_params(k_param, node_dim, edge_dim, hidden_dim,
                            conv_layers, linear_layers)
    slab, offsets = pack_param_slab(params, node_dim=node_dim,
                                    hidden_dim=hidden_dim,
                                    conv_layers=conv_layers,
                                    linear_layers=linear_layers)

    r_node = jax.random.normal(k_rn, (N_r, node_dim), jnp.float32)

    # Dense block-diagonal adjacency (self-loops + random intra-graph edges).
    # TODO(synk): the original DGL graph may use a degree-normalized adjacency.
    adj = jnp.eye(N_r, dtype=jnp.float32)
    src = jax.random.randint(k_adj, (n_edges,), 0, nodes_per_graph)
    dst = jax.random.randint(jax.random.fold_in(k_adj, 1), (n_edges,),
                             0, nodes_per_graph)
    gid = jnp.arange(n_edges) % B
    adj = adj.at[gid * nodes_per_graph + dst,
                 gid * nodes_per_graph + src].set(1.0)

    # Graph-membership (segment-sum) matrix, padded to B_PAD rows: [B_PAD, N_r].
    seg = jnp.repeat(jnp.arange(B), nodes_per_graph)
    pool_mat = (seg[None, :] == jnp.arange(B_PAD)[:, None]).astype(jnp.float32)

    out = network_forward(r_node, adj, pool_mat, slab, offsets,
                          conv_layers=conv_layers, linear_layers=linear_layers,
                          batch_size=B)
    out = jax.block_until_ready(out)
    assert out.shape == (B, 1) and out.dtype == jnp.float32

    ref = reference_forward(params, r_node, adj, seg, B,
                            conv_layers, linear_layers)
    ref = jax.block_until_ready(ref)
    assert jnp.allclose(out, ref, rtol=1e-2, atol=1e-2), \
        f"kernel/reference mismatch: {out} vs {ref}"

    print("KERNEL_OK")
</pallas_src>

<mosaic_0001>
module attributes {stable_mosaic.version = 11 : i64} {
  func.func @kernel(%arg0: memref<16x16xf32, #tpu.memory_space<vmem>>, %arg1: memref<16x16xf32, #tpu.memory_space<vmem>>, %arg2: memref<8x16xf32, #tpu.memory_space<vmem>>, %arg3: memref<920x128xf32, #tpu.memory_space<vmem>>, %arg4: memref<8x128xf32, #tpu.memory_space<vmem>>) attributes {dimension_semantics = [], scalar_prefetch = 0 : i64, scratch_operands = 0 : i64, tpu.core_type = #tpu.core_type<tc>} {
    %c0 = arith.constant 0 : index
    %c0_0 = arith.constant 0 : index
    %0 = vector.load %arg1[%c0, %c0_0] : memref<16x16xf32, #tpu.memory_space<vmem>>, vector<16x16xf32>
    %c0_1 = arith.constant 0 : index
    %c0_2 = arith.constant 0 : index
    %1 = vector.load %arg0[%c0_1, %c0_2] : memref<16x16xf32, #tpu.memory_space<vmem>>, vector<16x16xf32>
    %c0_3 = arith.constant 0 : index
    %c0_4 = arith.constant 0 : index
    %2 = vector.load %arg3[%c0_3, %c0_4] : memref<920x128xf32, #tpu.memory_space<vmem>>, vector<16x128xf32>
    %cst = arith.constant dense<0.000000e+00> : vector<16x128xf32>
    %3 = tpu.matmul %1, %2, %cst {dimension_numbers = #tpu.dot_dimension_numbers<[1], [0], [0], [1], [0, 0, 1, 1], [], []>} : vector<16x16xf32>, vector<16x128xf32>, vector<16x128xf32> -> vector<16x128xf32>
    %cst_5 = arith.constant dense<0.000000e+00> : vector<16x128xf32>
    %4 = tpu.matmul %0, %3, %cst_5 {dimension_numbers = #tpu.dot_dimension_numbers<[1], [0], [0], [1], [0, 0, 1, 1], [], []>} : vector<16x16xf32>, vector<16x128xf32>, vector<16x128xf32> -> vector<16x128xf32>
    %c16 = arith.constant 16 : index
    %c0_6 = arith.constant 0 : index
    %5 = vector.load %arg3[%c16, %c0_6] : memref<920x128xf32, #tpu.memory_space<vmem>>, vector<128x128xf32>
    %cst_7 = arith.constant dense<0.000000e+00> : vector<16x128xf32>
    %6 = tpu.matmul %4, %5, %cst_7 {dimension_numbers = #tpu.dot_dimension_numbers<[1], [0], [0], [1], [0, 0, 1, 1], [], []>} : vector<16x128xf32>, vector<128x128xf32>, vector<16x128xf32> -> vector<16x128xf32>
    %cst_8 = arith.constant 0.000000e+00 : f32
    %7 = vector.broadcast %cst_8 : f32 to vector<16x128xf32>
    %8 = arith.cmpf ogt, %6, %7 : vector<16x128xf32>
    %cst_9 = arith.constant 0.00999999977 : f32
    %9 = vector.broadcast %cst_9 : f32 to vector<16x128xf32>
    %10 = arith.mulf %9, %6 : vector<16x128xf32>
    %11 = arith.select %8, %6, %10 : vector<16x128xi1>, vector<16x128xf32>
    %cst_10 = arith.constant dense<0.000000e+00> : vector<16x128xf32>
    %12 = tpu.matmul %0, %11, %cst_10 {dimension_numbers = #tpu.dot_dimension_numbers<[1], [0], [0], [1], [0, 0, 1, 1], [], []>} : vector<16x16xf32>, vector<16x128xf32>, vector<16x128xf32> -> vector<16x128xf32>
    %c144 = arith.constant 144 : index
    %c0_11 = arith.constant 0 : index
    %13 = vector.load %arg3[%c144, %c0_11] : memref<920x128xf32, #tpu.memory_space<vmem>>, vector<128x128xf32>
    %cst_12 = arith.constant dense<0.000000e+00> : vector<16x128xf32>
    %14 = tpu.matmul %12, %13, %cst_12 {dimension_numbers = #tpu.dot_dimension_numbers<[1], [0], [0], [1], [0, 0, 1, 1], [], []>} : vector<16x128xf32>, vector<128x128xf32>, vector<16x128xf32> -> vector<16x128xf32>
    %cst_13 = arith.constant 0.000000e+00 : f32
    %15 = vector.broadcast %cst_13 : f32 to vector<16x128xf32>
    %16 = arith.cmpf ogt, %14, %15 : vector<16x128xf32>
    %cst_14 = arith.constant 0.00999999977 : f32
    %17 = vector.broadcast %cst_14 : f32 to vector<16x128xf32>
    %18 = arith.mulf %17, %14 : vector<16x128xf32>
    %19 = arith.select %16, %14, %18 : vector<16x128xi1>, vector<16x128xf32>
    %c0_15 = arith.constant 0 : index
    %c0_16 = arith.constant 0 : index
    %20 = vector.load %arg2[%c0_15, %c0_16] : memref<8x16xf32, #tpu.memory_space<vmem>>, vector<8x16xf32>
    %cst_17 = arith.constant dense<0.000000e+00> : vector<8x128xf32>
    %21 = tpu.matmul %20, %19, %cst_17 {dimension_numbers = #tpu.dot_dimension_numbers<[1], [0], [0], [1], [0, 0, 1, 1], [], []>} : vector<8x16xf32>, vector<16x128xf32>, vector<8x128xf32> -> vector<8x128xf32>
    %c784 = arith.constant 784 : index
    %c0_18 = arith.constant 0 : index
    %22 = vector.load %arg3[%c784, %c0_18] : memref<920x128xf32, #tpu.memory_space<vmem>>, vector<8x128xf32>
    %c272 = arith.constant 272 : index
    %c0_19 = arith.constant 0 : index
    %23 = vector.load %arg3[%c272, %c0_19] : memref<920x128xf32, #tpu.memory_space<vmem>>, vector<128x128xf32>
    %cst_20 = arith.constant dense<0.000000e+00> : vector<8x128xf32>
    %24 = tpu.matmul %21, %23, %cst_20 {dimension_numbers = #tpu.dot_dimension_numbers<[1], [0], [0], [1], [0, 0, 1, 1], [], []>} : vector<8x128xf32>, vector<128x128xf32>, vector<8x128xf32> -> vector<8x128xf32>
    %25 = vector.extract_strided_slice %22 {offsets = [0, 0], sizes = [1, 128], strides = [1, 1]} : vector<8x128xf32> to vector<1x128xf32>
    %26 = vector.shape_cast %25 : vector<1x128xf32> to vector<128xf32>
    %27 = vector.shape_cast %26 : vector<128xf32> to vector<1x128xf32>
    %28 = vector.broadcast %27 : vector<1x128xf32> to vector<8x128xf32>
    %29 = arith.addf %24, %28 : vector<8x128xf32>
    %cst_21 = arith.constant 0.000000e+00 : f32
    %30 = vector.broadcast %cst_21 : f32 to vector<8x128xf32>
    %31 = arith.maximumf %29, %30 : vector<8x128xf32>
    %c400 = arith.constant 400 : index
    %c0_22 = arith.constant 0 : index
    %32 = vector.load %arg3[%c400, %c0_22] : memref<920x128xf32, #tpu.memory_space<vmem>>, vector<128x128xf32>
    %cst_23 = arith.constant dense<0.000000e+00> : vector<8x128xf32>
    %33 = tpu.matmul %31, %32, %cst_23 {dimension_numbers = #tpu.dot_dimension_numbers<[1], [0], [0], [1], [0, 0, 1, 1], [], []>} : vector<8x128xf32>, vector<128x128xf32>, vector<8x128xf32> -> vector<8x128xf32>
    %34 = vector.extract_strided_slice %22 {offsets = [1, 0], sizes = [1, 128], strides = [1, 1]} : vector<8x128xf32> to vector<1x128xf32>
    %35 = vector.shape_cast %34 : vector<1x128xf32> to vector<128xf32>
    %36 = vector.shape_cast %35 : vector<128xf32> to vector<1x128xf32>
    %37 = vector.broadcast %36 : vector<1x128xf32> to vector<8x128xf32>
    %38 = arith.addf %33, %37 : vector<8x128xf32>
    %cst_24 = arith.constant 0.000000e+00 : f32
    %39 = vector.broadcast %cst_24 : f32 to vector<8x128xf32>
    %40 = arith.maximumf %38, %39 : vector<8x128xf32>
    %c528 = arith.constant 528 : index
    %c0_25 = arith.constant 0 : index
    %41 = vector.load %arg3[%c528, %c0_25] : memref<920x128xf32, #tpu.memory_space<vmem>>, vector<128x128xf32>
    %cst_26 = arith.constant dense<0.000000e+00> : vector<8x128xf32>
    %42 = tpu.matmul %40, %41, %cst_26 {dimension_numbers = #tpu.dot_dimension_numbers<[1], [0], [0], [1], [0, 0, 1, 1], [], []>} : vector<8x128xf32>, vector<128x128xf32>, vector<8x128xf32> -> vector<8x128xf32>
    %43 = vector.extract_strided_slice %22 {offsets = [2, 0], sizes = [1, 128], strides = [1, 1]} : vector<8x128xf32> to vector<1x128xf32>
    %44 = vector.shape_cast %43 : vector<1x128xf32> to vector<128xf32>
    %45 = vector.shape_cast %44 : vector<128xf32> to vector<1x128xf32>
    %46 = vector.broadcast %45 : vector<1x128xf32> to vector<8x128xf32>
    %47 = arith.addf %42, %46 : vector<8x128xf32>
    %cst_27 = arith.constant 0.000000e+00 : f32
    %48 = vector.broadcast %cst_27 : f32 to vector<8x128xf32>
    %49 = arith.maximumf %47, %48 : vector<8x128xf32>
    %c656 = arith.constant 656 : index
    %c0_28 = arith.constant 0 : index
    %50 = vector.load %arg3[%c656, %c0_28] : memref<920x128xf32, #tpu.memory_space<vmem>>, vector<128x128xf32>
    %cst_29 = arith.constant dense<0.000000e+00> : vector<8x128xf32>
    %51 = tpu.matmul %49, %50, %cst_29 {dimension_numbers = #tpu.dot_dimension_numbers<[1], [0], [0], [1], [0, 0, 1, 1], [], []>} : vector<8x128xf32>, vector<128x128xf32>, vector<8x128xf32> -> vector<8x128xf32>
    %52 = vector.extract_strided_slice %22 {offsets = [3, 0], sizes = [1, 128], strides = [1, 1]} : vector<8x128xf32> to vector<1x128xf32>
    %53 = vector.shape_cast %52 : vector<1x128xf32> to vector<128xf32>
    %54 = vector.shape_cast %53 : vector<128xf32> to vector<1x128xf32>
    %55 = vector.broadcast %54 : vector<1x128xf32> to vector<8x128xf32>
    %56 = arith.addf %51, %55 : vector<8x128xf32>
    %cst_30 = arith.constant 0.000000e+00 : f32
    %57 = vector.broadcast %cst_30 : f32 to vector<8x128xf32>
    %58 = arith.maximumf %56, %57 : vector<8x128xf32>
    %c792 = arith.constant 792 : index
    %c0_31 = arith.constant 0 : index
    %59 = vector.load %arg3[%c792, %c0_31] : memref<920x128xf32, #tpu.memory_space<vmem>>, vector<128x128xf32>
    %cst_32 = arith.constant dense<0.000000e+00> : vector<8x128xf32>
    %60 = tpu.matmul %58, %59, %cst_32 {dimension_numbers = #tpu.dot_dimension_numbers<[1], [0], [0], [1], [0, 0, 1, 1], [], []>} : vector<8x128xf32>, vector<128x128xf32>, vector<8x128xf32> -> vector<8x128xf32>
    %c0_33 = arith.constant 0 : index
    %c0_34 = arith.constant 0 : index
    %61 = vector.load %arg4[%c0_33, %c0_34] : memref<8x128xf32, #tpu.memory_space<vmem>>, vector<8x128xf32>
    tpu.vector_store %arg4[%c0_33, %c0_34], %60 {strides = array<i32>} : memref<8x128xf32, #tpu.memory_space<vmem>>, vector<8x128xf32>,
    return
  }
}

</mosaic_0001>

<bundles_post_ra>
// kernel: tpu_custom_call.1
= control target key start
LH: loop header
LB: loop body
LE: loop exit
PB: predicated region body
PF: predicated region fallthrough
CT: control target
= control target key end

     0   :  { %9 = vsyncpa [#allocation3], 0  ;;  %s1985_s0 = inlined_call_operand.hbm [shape: f32[16,16], index: 0, kind: input, shape index: {}]   ;;  %s1986_s1 = inlined_call_operand.hbm [shape: f32[16,16], index: 1, kind: input, shape index: {}]   ;;  %s1987_s2 = inlined_call_operand.hbm [shape: f32[8,16], index: 2, kind: input, shape index: {}]   ;;  %s1988_s3 = inlined_call_operand.hbm [shape: f32[920,128], index: 3, kind: input, shape index: {}]   ;;  %s1989_s4 = inlined_call_operand.hbm [shape: f32[8,128], index: 4, kind: output, shape index: {}]  }
   0x1   :  { %10 = vsyncpa [#allocation6], 0 }
   0x2   :  { %11 = vsyncpa [#allocation9], 0 }
   0x3   :  { %12 = vsyncpa [#allocation4], 0  ;;  %s1795_s15 = smov [#allocation5]   ;;  %s1796_s17 = smov [#allocation2]  }
   0x4   :  { %s30_s16 = sshll.u32 %s1795_s15, 4  ;;  %s18_s18 = sshll.u32 %s1796_s17, 4  ;;  %s31_s16 = int_to_ptr.vmem [resolvable:$true] %s30_s16  ;;  %s1830_s18 = int_to_ptr.vmem [resolvable:$true] %s18_s18 }
   0x5   :  { %s1677_s21 = scalar_lea.hbm %s1986_s1, 256 }
   0x6   :  { %p1678_p0 = scmp.ne.s32.totalorder %s1986_s1, %s1677_s21  ;;  %p1681_p1 = scmp.lt.u32.totalorder %s1677_s21, %s1986_s1 }
   0x8   :  { %p1683_p2 = pnand %p1681_p1, %p1678_p0 }
   0xa   :  { %1686 = shalt.err (!%p1683_p2)
}
   0xb   :  { %s1687_s26 = scalar_lea.vmem %s31_s16, 256  ;;  %p1692_p4 = scmp.lt.s32.totalorder %s31_s16, %s31_s16 }
   0xc   :  { %p1688_p3 = scmp.ne.s32.totalorder %s31_s16, %s1687_s26  ;;  %p1693_p5 = scmp.lt.s32.totalorder %s1687_s26, %s1687_s26 }
   0xe   :  { %p1694_p6 = por %p1693_p5, %p1692_p4 }
  0x10   :  { %p1695_p7 = pnand %p1694_p6, %p1688_p3 }
  0x12   :  { %1698 = shalt.err (!%p1695_p7)
}
  0x13   :  { %s1797_s27 = smov 128   ;;  %s1798_s28 = smov 8  }
  0x14   :  { %36 = dma.hbm_to_vmem [thread:$0]  %s1986_s1, 256, %s31_s16, [#allocation6], %s1797_s27, %s1797_s27, %s1798_s28  }
  0x15   :  { %s1699_s7 = scalar_lea.hbm %s1985_s0, 256 }
  0x16   :  { %p1700_p8 = scmp.ne.s32.totalorder %s1985_s0, %s1699_s7  ;;  %p1703_p9 = scmp.lt.u32.totalorder %s1699_s7, %s1985_s0 }
  0x18   :  { %p1705_p10 = pnand %p1703_p9, %p1700_p8 }
  0x1a   :  { %1708 = shalt.err (!%p1705_p10)
}
  0x1b   :  { %s1709_s12 = scalar_lea.vmem %s1830_s18, 256  ;;  %p1714_p12 = scmp.lt.s32.totalorder %s1830_s18, %s1830_s18 }
  0x1c   :  { %p1710_p11 = scmp.ne.s32.totalorder %s1830_s18, %s1709_s12  ;;  %p1715_p13 = scmp.lt.s32.totalorder %s1709_s12, %s1709_s12 }
  0x1e   :  { %p1716_p0 = por %p1715_p13, %p1714_p12 }
  0x20   :  { %p1717_p1 = pnand %p1716_p0, %p1710_p11 }
  0x22   :  { %1720 = shalt.err (!%p1717_p1)
}
  0x23   :  { %24 = dma.hbm_to_vmem [thread:$0]  %s1985_s0, 256, %s1830_s18, [#allocation3], %s1797_s27, %s1797_s27, %s1798_s28  }
  0x24   :  { %s1799_s14 = smov [#allocation7]   ;;  %s1800_s16 = smov [#allocation8]  }
  0x25   :  { %s43_s15 = sshll.u32 %s1799_s14, 4  ;;  %s52_s17 = sshll.u32 %s1800_s16, 4  ;;  %s44_s15 = int_to_ptr.vmem [resolvable:$true] %s43_s15  ;;  %s1867_s17 = int_to_ptr.vmem [resolvable:$true] %s52_s17 }
  0x26   :  { %s1721_s21 = scalar_lea.hbm %s1987_s2, 128 }
  0x27   :  { %p1722_p2 = scmp.ne.s32.totalorder %s1987_s2, %s1721_s21  ;;  %p1725_p3 = scmp.lt.u32.totalorder %s1721_s21, %s1987_s2 }
  0x29   :  { %p1727_p4 = pnand %p1725_p3, %p1722_p2 }
  0x2b   :  { %1730 = shalt.err (!%p1727_p4)
}
  0x2c   :  { %s1731_s0 = scalar_lea.vmem %s44_s15, 128  ;;  %p1736_p6 = scmp.lt.s32.totalorder %s44_s15, %s44_s15 }
  0x2d   :  { %p1732_p5 = scmp.ne.s32.totalorder %s44_s15, %s1731_s0  ;;  %p1737_p7 = scmp.lt.s32.totalorder %s1731_s0, %s1731_s0 }
  0x2f   :  { %p1738_p8 = por %p1737_p7, %p1736_p6 }
  0x31   :  { %p1739_p9 = pnand %p1738_p8, %p1732_p5 }
  0x33   :  { %1742 = shalt.err (!%p1739_p9)
}
  0x34   :  { %46 = dma.hbm_to_vmem [thread:$0]  %s1987_s2, 128, %s44_s15, [#allocation6]  }
  0x35   :  { %s1743_s5 = scalar_lea.hbm %s1988_s3, 14720 }
  0x36   :  { %p1744_p10 = scmp.ne.s32.totalorder %s1988_s3, %s1743_s5  ;;  %p1747_p11 = scmp.lt.u32.totalorder %s1743_s5, %s1988_s3 }
  0x38   :  { %p1749_p12 = pnand %p1747_p11, %p1744_p10 }
  0x3a   :  { %1752 = shalt.err (!%p1749_p12)
}
  0x3b   :  { %s1753_s10 = scalar_lea.vmem %s1867_s17, 14720  ;;  %p1758_p0 = scmp.lt.s32.totalorder %s1867_s17, %s1867_s17 }
  0x3c   :  { %p1754_p13 = scmp.ne.s32.totalorder %s1867_s17, %s1753_s10  ;;  %p1759_p1 = scmp.lt.s32.totalorder %s1753_s10, %s1753_s10 }
  0x3e   :  { %p1760_p2 = por %p1759_p1, %p1758_p0 }
  0x40   :  { %p1761_p3 = pnand %p1760_p2, %p1754_p13 }
  0x42   :  { %1764 = shalt.err (!%p1761_p3)
}
  0x43   :  { %58 = dma.hbm_to_vmem [thread:$0]  %s1988_s3, 14720, %s1867_s17, [#allocation9], %s1797_s27, %s1797_s27, %s1798_s28  }
  0x44   :  { %1787 = dma.done.wait [#allocation3], 256  }
  0x45   :  { %1788 = vsyncadd [#allocation3], 4294967040 }
  0x46   :  { %1789 = dma.done.wait [#allocation6], 384  }
  0x47   :  { %1790 = vsyncadd [#allocation6], 4294966912 }
  0x48   :  { %1791 = dma.done.wait [#allocation9], 14720  }
  0x49   :  { %1792 = vsyncadd [#allocation9], 4294952576  ;;  %vm77_vm0 = vcmask 130048   ;;  %v75_v0 = vld [vmem:[#allocation8] sm:$0xff]  ;;  %v76_v1 = vld [vmem:[#allocation8 + $0x8] sm:$0xff]  ;;  %vm1802_vm3 = vmmov 0  }
  0x4a   :  { %v73_v2 = vld [vmem:[#allocation2] sm:$0xff]  ;;  %v1468_v3 = vpack.c.bf16 %v76_v1, %v75_v0  ;;  %v74_v4 = vld [vmem:[#allocation2 + $0x8] sm:$0xff]  ;;  %v71_v5 = vld [vmem:[#allocation5] sm:$0xff]  ;;  %s1804_s3 = smov [#allocation10]  }
  0x4b   :  { %1199 = vmatprep.mubr.msk.f32.mxu1 %vm77_vm0, %v73_v2  ;;  %v240_v6 = vld [vmem:[#allocation8 + $0x10] sm:$0xff]  ;;  %v241_v7 = vld [vmem:[#allocation8 + $0x18] sm:$0xff]  ;;  %v242_v8 = vld [vmem:[#allocation8 + $0x20] sm:$0xff]  ;;  %s1041_s27 = sshll.u32 %s1804_s3, 4  ;;  %s1042_s27 = int_to_ptr.vmem [resolvable:$true] %s1041_s27 }
  0x4c   :  { %1469 = vmatprep.subr.bf16.mxu1 %v1468_v3  ;;  %v1476_v9 = vpack.c.bf16 %v241_v7, %v240_v6  ;;  %v243_v10 = vld [vmem:[#allocation8 + $0x28] sm:$0xff]  ;;  %v244_v12 = vld [vmem:[#allocation8 + $0x30] sm:$0xff]  ;;  %v245_v13 = vld [vmem:[#allocation8 + $0x38] sm:$0xff]  ;;  %v1803_v6 = vmov 0.0   ;;  %s1765_s28 = scalar_lea.vmem %s1042_s27, 128  ;;  %p1770_p5 = scmp.lt.s32.totalorder %s1042_s27, %s1042_s27 }
  0x4d   :  { %1471 = vmatpush3.bf16.msra.mxu1 %v1468_v3  ;;  %v1480_v11 = vpack.c.bf16 %v243_v10, %v242_v8  ;;  %v1484_v14 = vpack.c.bf16 %v245_v13, %v244_v12  ;;  %v246_v15 = vld [vmem:[#allocation8 + $0x40] sm:$0xff]  ;;  %v247_v16 = vld [vmem:[#allocation8 + $0x48] sm:$0xff]  ;;  %v248_v18 = vld [vmem:[#allocation8 + $0x50] sm:$0xff]  ;;  %p1766_p4 = scmp.ne.s32.totalorder %s1042_s27, %s1765_s28  ;;  %p1771_p6 = scmp.lt.s32.totalorder %s1765_s28, %s1765_s28 }
  0x4e   :  { %1477 = vmatprep.subr.bf16.mxu0 %v1476_v9  ;;  %v1488_v17 = vpack.c.bf16 %v247_v16, %v246_v15  ;;  %v249_v19 = vld [vmem:[#allocation8 + $0x58] sm:$0xff]  ;;  %v250_v21 = vld [vmem:[#allocation8 + $0x60] sm:$0xff]  ;;  %v251_v22 = vld [vmem:[#allocation8 + $0x68] sm:$0xff] }
  0x4f   :  { %1479 = vmatpush3.bf16.msra.mxu0 %v1476_v9  ;;  %v1492_v20 = vpack.c.bf16 %v249_v19, %v248_v18  ;;  %v1496_v23 = vpack.c.bf16 %v251_v22, %v250_v21  ;;  %v252_v24 = vld [vmem:[#allocation8 + $0x70] sm:$0xff]  ;;  %v253_v25 = vld [vmem:[#allocation8 + $0x78] sm:$0xff]  ;;  %v254_v27 = vld [vmem:[#allocation8 + $0x80] sm:$0xff]  ;;  %p1772_p7 = por %p1771_p6, %p1770_p5 }
  0x50   :  { %1200 = vmatmul.mubr.msk.f32.vlgmr.msra.gmra.mrb[0].mxu1 %vm77_vm0, %v74_v4  ;;  %1481 = vmatprep.subr.bf16.mxu0 %v1480_v11  ;;  %v1500_v26 = vpack.c.bf16 %v253_v25, %v252_v24  ;;  %v255_v28 = vld [vmem:[#allocation8 + $0x88] sm:$0xff]  ;;  %v72_v33 = vld [vmem:[#allocation5 + $0x8] sm:$0xff]  ;;  %v413_v41 = vld [vmem:[#allocation8 + $0x98] sm:$0xff] }
  0x51   :  { %1206 = vmatprep.mubr.msk.f32.mxu1 %vm77_vm0, %v71_v5  ;;  %v1504_v29 = vpack.c.bf16 %v255_v28, %v254_v27  ;;  %v412_v40 = vld [vmem:[#allocation8 + $0x90] sm:$0xff]  ;;  %v414_v46 = vld [vmem:[#allocation8 + $0xa0] sm:$0xff]  ;;  %v415_v47 = vld [vmem:[#allocation8 + $0xa8] sm:$0xff]  ;;  %p1773_p8 = pnand %p1772_p7, %p1766_p4 }
  0x52   :  { %v1512_v45 = vpack.c.bf16 %v413_v41, %v412_v40  ;;  %v1516_v48 = vpack.c.bf16 %v415_v47, %v414_v46  ;;  %v416_v49 = vld [vmem:[#allocation8 + $0xb0] sm:$0xff]  ;;  %v417_v50 = vld [vmem:[#allocation8 + $0xb8] sm:$0xff]  ;;  %v418_v52 = vld [vmem:[#allocation8 + $0xc0] sm:$0xff] }
  0x53   :  { %1483 = vmatpush3.bf16.msra.mxu0 %v1480_v11  ;;  %v1520_v51 = vpack.c.bf16 %v417_v50, %v416_v49  ;;  %v419_v53 = vld [vmem:[#allocation8 + $0xc8] sm:$0xff]  ;;  %v420_v55 = vld [vmem:[#allocation8 + $0xd0] sm:$0xff]  ;;  %v421_v56 = vld [vmem:[#allocation8 + $0xd8] sm:$0xff] }
  0x54   :  { %1485 = vmatprep.subr.bf16.mxu0 %v1484_v14  ;;  %v1524_v54 = vpack.c.bf16 %v419_v53, %v418_v52  ;;  %v1528_v57 = vpack.c.bf16 %v421_v56, %v420_v55  ;;  %v422_v58 = vld [vmem:[#allocation8 + $0xe0] sm:$0xff]  ;;  %v423_v59 = vld [vmem:[#allocation8 + $0xe8] sm:$0xff]  ;;  %v424_v61 = vld [vmem:[#allocation8 + $0xf0] sm:$0xff] }
  0x55   :  { %v1532_v60 = vpack.c.bf16 %v423_v59, %v422_v58  ;;  %v425_v62 = vld [vmem:[#allocation8 + $0xf8] sm:$0xff]  ;;  %v426_v0 = vld [vmem:[#allocation8 + $0x100] sm:$0xff]  ;;  %v427_v1 = vld [vmem:[#allocation8 + $0x108] sm:$0xff] }
  0x56   :  { %v1536_v63 = vpack.c.bf16 %v425_v62, %v424_v61  ;;  %v1540_v2 = vpack.c.bf16 %v427_v1, %v426_v0  ;;  %v584_v7 = vld [vmem:[#allocation8 + $0x110] sm:$0xff]  ;;  %v585_v8 = vld [vmem:[#allocation8 + $0x118] sm:$0xff]  ;;  %v586_v9 = vld [vmem:[#allocation8 + $0x120] sm:$0xff] }
  0x57   :  { %1487 = vmatpush3.bf16.msra.mxu0 %v1484_v14  ;;  %v1548_v10 = vpack.c.bf16 %v585_v8, %v584_v7  ;;  %v587_v11 = vld [vmem:[#allocation8 + $0x128] sm:$0xff]  ;;  %v588_v13 = vld [vmem:[#allocation8 + $0x130] sm:$0xff]  ;;  %v589_v14 = vld [vmem:[#allocation8 + $0x138] sm:$0xff] }
  0x58   :  { %1489 = vmatprep.subr.bf16.mxu0 %v1488_v17  ;;  %v1551_v12 = vpack.c.bf16 %v587_v11, %v586_v9  ;;  %v1554_v15 = vpack.c.bf16 %v589_v14, %v588_v13  ;;  %v590_v16 = vld [vmem:[#allocation8 + $0x140] sm:$0xff]  ;;  %v592_v19 = vld [vmem:[#allocation8 + $0x150] sm:$0xff]  ;;  %v676_v40 = vld [vmem:[#allocation8 + $0x198] sm:$0xff] }
  0x59   :  { %v594_v22 = vld [vmem:[#allocation8 + $0x160] sm:$0xff]  ;;  %v596_v25 = vld [vmem:[#allocation8 + $0x170] sm:$0xff]  ;;  %v680_v46 = vld [vmem:[#allocation8 + $0x1b8] sm:$0xff] }
  0x5a   :  { %v598_v28 = vld [vmem:[#allocation8 + $0x180] sm:$0xff]  ;;  %v682_v49 = vld [vmem:[#allocation8 + $0x1c8] sm:$0xff]  ;;  %v684_v52 = vld [vmem:[#allocation8 + $0x1d8] sm:$0xff] }
  0x5b   :  { %1491 = vmatpush3.bf16.msra.mxu0 %v1488_v17  ;;  %v591_v17 = vld [vmem:[#allocation8 + $0x148] sm:$0xff]  ;;  %v677_v41 = vld [vmem:[#allocation8 + $0x1a0] sm:$0xff]  ;;  %v688_v58 = vld [vmem:[#allocation8 + $0x1f8] sm:$0xff] }
  0x5c   :  { %1493 = vmatprep.subr.bf16.mxu0 %v1492_v20  ;;  %v1557_v18 = vpack.c.bf16 %v591_v17, %v590_v16  ;;  %v686_v55 = vld [vmem:[#allocation8 + $0x1e8] sm:$0xff]  ;;  %v689_v62 = vld [vmem:[#allocation8 + $0x200] sm:$0xff]  ;;  %v766_v1 = vld [vmem:[#allocation8 + $0x210] sm:$0xff] }
  0x5d   :  { %v769_v7 = vld [vmem:[#allocation8 + $0x228] sm:$0xff]  ;;  %v770_v9 = vld [vmem:[#allocation8 + $0x230] sm:$0xff]  ;;  %v775_v16 = vld [vmem:[#allocation8 + $0x258] sm:$0xff] }
  0x5e   :  { %v773_v13 = vld [vmem:[#allocation8 + $0x248] sm:$0xff] }
  0x5f   :  { %1495 = vmatpush3.bf16.msra.mxu0 %v1492_v20  ;;  %v593_v20 = vld [vmem:[#allocation8 + $0x158] sm:$0xff] }
  0x60   :  { %1497 = vmatprep.subr.bf16.mxu0 %v1496_v23  ;;  %v1560_v21 = vpack.c.bf16 %v593_v20, %v592_v19  ;;  %v777_v19 = vld [vmem:[#allocation8 + $0x268] sm:$0xff] }
  0x63   :  { %1499 = vmatpush3.bf16.msra.mxu0 %v1496_v23  ;;  %v595_v23 = vld [vmem:[#allocation8 + $0x168] sm:$0xff] }
  0x64   :  { %1501 = vmatprep.subr.bf16.mxu0 %v1500_v26  ;;  %v1563_v24 = vpack.c.bf16 %v595_v23, %v594_v22  ;;  %v779_v22 = vld [vmem:[#allocation8 + $0x278] sm:$0xff] }
  0x67   :  { %1503 = vmatpush3.bf16.msra.mxu0 %v1500_v26  ;;  %v597_v26 = vld [vmem:[#allocation8 + $0x178] sm:$0xff] }
  0x68   :  { %1505 = vmatprep.subr.bf16.mxu0 %v1504_v29  ;;  %v1566_v27 = vpack.c.bf16 %v597_v26, %v596_v25 }
  0x6b   :  { %1507 = vmatpush3.bf16.msra.mxu0 %v1504_v29  ;;  %v599_v29 = vld [vmem:[#allocation8 + $0x188] sm:$0xff] }
 0x123   :  { %v1201_v30 = vpop.f32.mrb[0].mxu1 }
 0x124   :  { %v150_v31 = vpop.f32.mrb[1].mxu1 }
 0x125   :  { %v1472_v32 = vpack.c.bf16 %v1201_v30, %v150_v31  ;;  %v1569_v30 = vpack.c.bf16 %v599_v29, %v598_v28 }
 0x127   :  { %1473 = vmatprep.subr.bf16.mxu1 %v1472_v32 }
 0x128   :  { %1475 = vmatpush3.bf16.msra.mxu1 %v1472_v32 }
 0x12b   :  { %1207 = vmatmul.mubr.msk.f32.vlgmr.msra.gmra.mrb[2].mxu1 %vm77_vm0, %v72_v33 }
 0x12c   :  { %1248 = vmatprep.mubr.msk.f32.mxu1 %vm77_vm0, %v71_v5  ;;  %v1801_v5 = vmov 0.0|0.0  }
 0x12d   :  { %1547 = vmatprep.subr.bf16.mxu0 %v1801_v5 }
 0x1fe   :  { %v1208_v34 = vpop.f32.mrb[2].mxu1 }
 0x1ff   :  { %v231_v35 = vpop.f32.mrb[3].mxu1 }
 0x200   :  { %1241 = vmatprep.mubr.f32.mxu0 %v231_v35 }
 0x201   :  { %1242 = vmatmul.mubr.f32.vlgmr.msra.gmra.mrb[0].mxu0 %v1208_v34 }
 0x202   :  { %1325 = vmatprep.mubr.msk.f32.mxu0 %vm1802_vm3, %v1803_v6  ;;  %1549 = vmatpush3.bf16.msra.mxu0 %v1548_v10  ;;  %v771_v10 = vld [vmem:[#allocation8 + $0x238] sm:$0xff] }
 0x203   :  { %1550 = vmatprep.subr.bf16.mxu0 %v1801_v5  ;;  %v1602_v11 = vpack.c.bf16 %v771_v10, %v770_v9  ;;  %v952_v10 = vld [vmem:[#allocation8 + $0x338] sm:$0xff] }
 0x206   :  { %1552 = vmatpush3.bf16.msra.mxu0 %v1551_v12  ;;  %v772_v12 = vld [vmem:[#allocation8 + $0x240] sm:$0xff] }
 0x207   :  { %1553 = vmatprep.subr.bf16.mxu0 %v1801_v5  ;;  %v1605_v14 = vpack.c.bf16 %v773_v13, %v772_v12  ;;  %v955_v13 = vld [vmem:[#allocation8 + $0x350] sm:$0xff] }
 0x20a   :  { %1555 = vmatpush3.bf16.msra.mxu0 %v1554_v15  ;;  %v774_v15 = vld [vmem:[#allocation8 + $0x250] sm:$0xff] }
 0x20b   :  { %1556 = vmatprep.subr.bf16.mxu0 %v1801_v5  ;;  %v1608_v17 = vpack.c.bf16 %v775_v16, %v774_v15  ;;  %v956_v15 = vld [vmem:[#allocation8 + $0x358] sm:$0xff]  ;;  %v957_v16 = vld [vmem:[#allocation8 + $0x360] sm:$0xff] }
 0x20e   :  { %1558 = vmatpush3.bf16.msra.mxu0 %v1557_v18  ;;  %v776_v18 = vld [vmem:[#allocation8 + $0x260] sm:$0xff] }
 0x20f   :  { %1559 = vmatprep.subr.bf16.mxu0 %v1801_v5  ;;  %v1611_v20 = vpack.c.bf16 %v777_v19, %v776_v18  ;;  %v958_v18 = vld [vmem:[#allocation8 + $0x368] sm:$0xff]  ;;  %v959_v19 = vld [vmem:[#allocation8 + $0x370] sm:$0xff] }
 0x212   :  { %1561 = vmatpush3.bf16.msra.mxu0 %v1560_v21  ;;  %v778_v21 = vld [vmem:[#allocation8 + $0x270] sm:$0xff] }
 0x213   :  { %1562 = vmatprep.subr.bf16.mxu0 %v1801_v5  ;;  %v1614_v23 = vpack.c.bf16 %v779_v22, %v778_v21  ;;  %v960_v21 = vld [vmem:[#allocation8 + $0x378] sm:$0xff]  ;;  %v961_v22 = vld [vmem:[#allocation8 + $0x380] sm:$0xff] }
 0x216   :  { %1564 = vmatpush3.bf16.msra.mxu0 %v1563_v24  ;;  %v600_v24 = vlaneseq }
 0x217   :  { %1565 = vmatprep.subr.bf16.mxu0 %v1801_v5 }
 0x218   :  { %v1942_v25 = vshrl.u32 %v600_v24, 7 }
 0x21a   :  { %1567 = vmatpush3.bf16.msra.mxu0 %v1566_v27  ;;  %v602_v26 = vsub.s32 0, %v1942_v25  ;;  %v1945_v27 = vld [vmem:[#allocation8 + $0x310] sm:$0xff]  ;;  %v784_v24 = vsub.s32 2, %v1942_v25 }
 0x21b   :  { %1568 = vmatprep.subr.bf16.mxu0 %v1801_v5 }
 0x21c   :  { %v603_v28 = vrot.slane %v1945_v27, %v602_v26  ;;  %v785_v26 = vrot.slane %v1945_v27, %v784_v24 }
 0x21e   :  { %1570 = vmatpush3.bf16.msra.mxu0 %v1569_v30 }
 0x21f   :  { %1595 = vmatprep.subr.bf16.mxu0 %v1801_v5 }
 0x2d4   :  { %v1243_v36 = vpop.f32.mrb[0].mxu0 }
 0x2d5   :  { %vm332_vm1 = vcmp.gt.f32.partialorder %v1243_v36, 0.0  ;;  %v334_v37 = vmul.f32 0.01, %v1243_v36  ;;  %v322_v38 = vpop.f32.mrb[1].mxu0 }
 0x2d6   :  { %vm331_vm2 = vcmp.gt.f32.partialorder %v322_v38, 0.0  ;;  %v333_v39 = vmul.f32 0.01, %v322_v38 }
 0x2d7   :  { %v336_v42 = vsel %vm332_vm1, %v1243_v36, %v334_v37 }
 0x2d8   :  { %v335_v43 = vsel %vm331_vm2, %v322_v38, %v333_v39  ;;  %v509_v38 = vld [vmem:[#allocation7] sm:$0xff]  ;;  %v675_v39 = vld [vmem:[#allocation8 + $0x190] sm:$0xff] }
 0x2d9   :  { %v1508_v44 = vpack.c.bf16 %v336_v42, %v335_v43  ;;  %v1572_v42 = vpack.c.bf16 %v676_v40, %v675_v39  ;;  %v678_v43 = vld [vmem:[#allocation8 + $0x1a8] sm:$0xff] }
 0x2da   :  { %v860_v40 = vld [vmem:[#allocation8 + $0x2a8] sm:$0xff] }
 0x2db   :  { %1509 = vmatprep.subr.bf16.mxu1 %v1508_v44 }
 0x2dc   :  { %1511 = vmatpush3.bf16.msra.mxu1 %v1508_v44  ;;  %v1575_v44 = vpack.c.bf16 %v678_v43, %v677_v41  ;;  %v862_v43 = vld [vmem:[#allocation8 + $0x2b8] sm:$0xff] }
 0x2dd   :  { %1513 = vmatprep.subr.bf16.mxu1 %v1512_v45 }
 0x2df   :  { %1249 = vmatmul.mubr.msk.f32.vlgmr.msra.gmra.mrb[4].mxu1 %vm77_vm0, %v72_v33 }
 0x2e0   :  { %1515 = vmatpush3.bf16.msra.mxu1 %v1512_v45  ;;  %v679_v45 = vld [vmem:[#allocation8 + $0x1b0] sm:$0xff] }
 0x2e1   :  { %1517 = vmatprep.subr.bf16.mxu1 %v1516_v48  ;;  %v1578_v47 = vpack.c.bf16 %v680_v46, %v679_v45  ;;  %v863_v45 = vld [vmem:[#allocation8 + $0x2c0] sm:$0xff]  ;;  %v864_v46 = vld [vmem:[#allocation8 + $0x2c8] sm:$0xff] }
 0x2e4   :  { %1519 = vmatpush3.bf16.msra.mxu1 %v1516_v48  ;;  %v681_v48 = vld [vmem:[#allocation8 + $0x1c0] sm:$0xff] }
 0x2e5   :  { %1521 = vmatprep.subr.bf16.mxu1 %v1520_v51  ;;  %v1581_v50 = vpack.c.bf16 %v682_v49, %v681_v48  ;;  %v865_v48 = vld [vmem:[#allocation8 + $0x2d0] sm:$0xff]  ;;  %v866_v49 = vld [vmem:[#allocation8 + $0x2d8] sm:$0xff] }
 0x2e8   :  { %1523 = vmatpush3.bf16.msra.mxu1 %v1520_v51  ;;  %v683_v51 = vld [vmem:[#allocation8 + $0x1d0] sm:$0xff] }
 0x2e9   :  { %1525 = vmatprep.subr.bf16.mxu1 %v1524_v54  ;;  %v1584_v53 = vpack.c.bf16 %v684_v52, %v683_v51  ;;  %v867_v51 = vld [vmem:[#allocation8 + $0x2e0] sm:$0xff]  ;;  %v868_v52 = vld [vmem:[#allocation8 + $0x2e8] sm:$0xff] }
 0x2ec   :  { %1527 = vmatpush3.bf16.msra.mxu1 %v1524_v54  ;;  %v685_v54 = vld [vmem:[#allocation8 + $0x1e0] sm:$0xff] }
 0x2ed   :  { %1529 = vmatprep.subr.bf16.mxu1 %v1528_v57  ;;  %v1587_v56 = vpack.c.bf16 %v686_v55, %v685_v54  ;;  %v869_v54 = vld [vmem:[#allocation8 + $0x2f0] sm:$0xff]  ;;  %v870_v55 = vld [vmem:[#allocation8 + $0x2f8] sm:$0xff] }
 0x2f0   :  { %1531 = vmatpush3.bf16.msra.mxu1 %v1528_v57  ;;  %v687_v57 = vld [vmem:[#allocation8 + $0x1f0] sm:$0xff] }
 0x2f1   :  { %1533 = vmatprep.subr.bf16.mxu1 %v1532_v60  ;;  %v1590_v59 = vpack.c.bf16 %v688_v58, %v687_v57  ;;  %v693_v57 = vsub.s32 1, %v1942_v25 }
 0x2f3   :  { %v694_v58 = vrot.slane %v1945_v27, %v693_v57 }
 0x2f4   :  { %1535 = vmatpush3.bf16.msra.mxu1 %v1532_v60 }
 0x2f5   :  { %1537 = vmatprep.subr.bf16.mxu1 %v1536_v63 }
 0x2f8   :  { %1539 = vmatpush3.bf16.msra.mxu1 %v1536_v63  ;;  %v690_v63 = vld [vmem:[#allocation8 + $0x208] sm:$0xff] }
 0x2f9   :  { %1541 = vmatprep.subr.bf16.mxu1 %v1540_v2  ;;  %v1593_v0 = vpack.c.bf16 %v690_v63, %v689_v62  ;;  %v871_v63 = vld [vmem:[#allocation8 + $0x300] sm:$0xff] }
 0x2fc   :  { %1543 = vmatpush3.bf16.msra.mxu1 %v1540_v2  ;;  %v767_v2 = vld [vmem:[#allocation8 + $0x218] sm:$0xff] }
 0x2fd   :  { %1544 = vmatprep.subr.bf16.mxu1 %v1801_v5 }
 0x3b2   :  { %v1250_v3 = vpop.f32.mrb[4].mxu1 }
 0x3b3   :  { %v403_v4 = vpop.f32.mrb[5].mxu1 }
 0x3b4   :  { %1283 = vmatprep.mubr.f32.mxu1 %v403_v4  ;;  %v1596_v4 = vpack.c.bf16 %v767_v2, %v766_v1  ;;  %v948_v2 = vld [vmem:[#allocation8 + $0x318] sm:$0xff] }
 0x3b5   :  { %1284 = vmatmul.mubr.f32.vlgmr.msra.gmra.mrb[6].mxu1 %v1250_v3  ;;  %v768_v3 = vld [vmem:[#allocation8 + $0x220] sm:$0xff] }
 0x3b6   :  { %1290 = vmatprep.mubr.msk.f32.mxu1 %vm1802_vm3, %v1803_v6  ;;  %v1599_v8 = vpack.c.bf16 %v769_v7, %v768_v3  ;;  %v949_v3 = vld [vmem:[#allocation8 + $0x320] sm:$0xff] }
 0x3b7   :  { %v1644_v7 = vpack.c.bf16 %v949_v3, %v948_v2 }
 0x488   :  { %v1285_v31 = vpop.f32.mrb[6].mxu1 }
 0x489   :  { %vm504_vm4 = vcmp.gt.f32.partialorder %v1285_v31, 0.0  ;;  %v506_v32 = vmul.f32 0.01, %v1285_v31  ;;  %v494_v33 = vpop.f32.mrb[7].mxu1 }
 0x48a   :  { %vm503_vm5 = vcmp.gt.f32.partialorder %v494_v33, 0.0  ;;  %v505_v34 = vmul.f32 0.01, %v494_v33 }
 0x48b   :  { %v508_v35 = vsel %vm504_vm4, %v1285_v31, %v506_v32 }
 0x48c   :  { %v507_v36 = vsel %vm503_vm5, %v494_v33, %v505_v34  ;;  %v780_v33 = vld [vmem:[#allocation8 + $0x280] sm:$0xff]  ;;  %v781_v34 = vld [vmem:[#allocation8 + $0x288] sm:$0xff] }
 0x48d   :  { %v1545_v37 = vpack.c.bf16 %v508_v35, %v507_v36  ;;  %v1617_v35 = vpack.c.bf16 %v781_v34, %v780_v33  ;;  %v857_v36 = vld [vmem:[#allocation8 + $0x290] sm:$0xff] }
 0x48e   :  { %v963_v33 = vld [vmem:[#allocation8 + $0x390] sm:$0xff] }
 0x48f   :  { %1546 = vmatpush3.bf16.msra.mxu1 %v1545_v37  ;;  %v858_v37 = vld [vmem:[#allocation8 + $0x298] sm:$0xff] }
 0x490   :  { %1571 = vmatprep.subr.bf16.mxu1 %v1801_v5  ;;  %v1620_v39 = vpack.c.bf16 %v858_v37, %v857_v36 }
 0x492   :  { %1291 = vmatmul.mubr.msk.f32.vlgmr.msra.gmra.mrb[8].mxu1 %vm77_vm0, %v509_v38  ;;  %v859_v38 = vld [vmem:[#allocation8 + $0x2a0] sm:$0xff] }
 0x493   :  { %1360 = vmatprep.mubr.msk.f32.mxu1 %vm1802_vm3, %v1803_v6  ;;  %1573 = vmatpush3.bf16.msra.mxu1 %v1572_v42  ;;  %v1623_v41 = vpack.c.bf16 %v860_v40, %v859_v38  ;;  %v861_v42 = vld [vmem:[#allocation8 + $0x2b0] sm:$0xff] }
 0x494   :  { %1574 = vmatprep.subr.bf16.mxu1 %v1801_v5 }
 0x497   :  { %1576 = vmatpush3.bf16.msra.mxu1 %v1575_v44  ;;  %v1626_v44 = vpack.c.bf16 %v862_v43, %v861_v42 }
 0x498   :  { %1577 = vmatprep.subr.bf16.mxu1 %v1801_v5 }
 0x49b   :  { %1579 = vmatpush3.bf16.msra.mxu1 %v1578_v47  ;;  %v1629_v47 = vpack.c.bf16 %v864_v46, %v863_v45 }
 0x49c   :  { %1580 = vmatprep.subr.bf16.mxu1 %v1801_v5 }
 0x49f   :  { %1582 = vmatpush3.bf16.msra.mxu1 %v1581_v50  ;;  %v1632_v50 = vpack.c.bf16 %v866_v49, %v865_v48 }
 0x4a0   :  { %1583 = vmatprep.subr.bf16.mxu1 %v1801_v5 }
 0x4a3   :  { %1585 = vmatpush3.bf16.msra.mxu1 %v1584_v53  ;;  %v1635_v53 = vpack.c.bf16 %v868_v52, %v867_v51 }
 0x4a4   :  { %1586 = vmatprep.subr.bf16.mxu1 %v1801_v5 }
 0x4a7   :  { %1588 = vmatpush3.bf16.msra.mxu1 %v1587_v56  ;;  %v1638_v56 = vpack.c.bf16 %v870_v55, %v869_v54 }
 0x4a8   :  { %1589 = vmatprep.subr.bf16.mxu1 %v1801_v5 }
 0x4ab   :  { %1591 = vmatpush3.bf16.msra.mxu1 %v1590_v59 }
 0x4ac   :  { %1592 = vmatprep.subr.bf16.mxu1 %v1801_v5 }
 0x4af   :  { %1594 = vmatpush3.bf16.msra.mxu1 %v1593_v0  ;;  %v872_v0 = vld [vmem:[#allocation8 + $0x308] sm:$0xff] }
 0x4b0   :  { %1619 = vmatprep.subr.bf16.mxu1 %v1801_v5  ;;  %v1641_v1 = vpack.c.bf16 %v872_v0, %v871_v63 }
 0x565   :  { %v579_v60 = vpop.f32.mrb[8].mxu1 }
 0x566   :  { %v1292_v61 = vpop.f32.mrb[9].mxu1  ;;  %1326 = vmatmul.mubr.f32.vlgmr.msra.gmra.mrb[2].mxu0 %v579_v60 }
 0x567   :  { %1395 = vmatprep.mubr.msk.f32.mxu0 %vm1802_vm3, %v1803_v6  ;;  %1597 = vmatpush3.bf16.msra.mxu0 %v1596_v4  ;;  %v950_v4 = vld [vmem:[#allocation8 + $0x328] sm:$0xff] }
 0x568   :  { %1598 = vmatprep.subr.bf16.mxu0 %v1801_v5 }
 0x56b   :  { %1600 = vmatpush3.bf16.msra.mxu0 %v1599_v8  ;;  %v951_v8 = vld [vmem:[#allocation8 + $0x330] sm:$0xff] }
 0x56c   :  { %1601 = vmatprep.subr.bf16.mxu0 %v1801_v5  ;;  %v1647_v9 = vpack.c.bf16 %v951_v8, %v950_v4 }
 0x56f   :  { %1603 = vmatpush3.bf16.msra.mxu0 %v1602_v11  ;;  %v953_v11 = vld [vmem:[#allocation8 + $0x340] sm:$0xff] }
 0x570   :  { %1604 = vmatprep.subr.bf16.mxu0 %v1801_v5  ;;  %v1650_v12 = vpack.c.bf16 %v953_v11, %v952_v10 }
 0x573   :  { %1606 = vmatpush3.bf16.msra.mxu0 %v1605_v14 }
 0x574   :  { %1607 = vmatprep.subr.bf16.mxu0 %v1801_v5 }
 0x577   :  { %1609 = vmatpush3.bf16.msra.mxu0 %v1608_v17  ;;  %v1656_v17 = vpack.c.bf16 %v957_v16, %v956_v15 }
 0x578   :  { %1610 = vmatprep.subr.bf16.mxu0 %v1801_v5 }
 0x57b   :  { %1612 = vmatpush3.bf16.msra.mxu0 %v1611_v20  ;;  %v1659_v20 = vpack.c.bf16 %v959_v19, %v958_v18 }
 0x57c   :  { %1613 = vmatprep.subr.bf16.mxu0 %v1801_v5 }
 0x57f   :  { %1615 = vmatpush3.bf16.msra.mxu0 %v1614_v23  ;;  %v1662_v23 = vpack.c.bf16 %v961_v22, %v960_v21 }
 0x580   :  { %1616 = vmatprep.subr.bf16.mxu0 %v1801_v5 }
 0x583   :  { %1618 = vmatpush3.bf16.msra.mxu0 %v1617_v35  ;;  %v875_v35 = vsub.s32 3, %v1942_v25 }
 0x584   :  { %1643 = vmatprep.subr.bf16.mxu0 %v1801_v5 }
 0x585   :  { %v876_v36 = vrot.slane %v1945_v27, %v875_v35 }
 0x639   :  { %v670_v29 = vpop.f32.mrb[2].mxu0 }
 0x63a   :  { %v671_v30 = vadd.f32 %v670_v29, %v603_v28  ;;  %v1327_v31 = vpop.f32.mrb[3].mxu0 }
 0x63c   :  { %v674_v32 = vmax.f32 %v671_v30, 0.0 }
 0x63e   :  { %1361 = vmatmul.mubr.f32.vlgmr.msra.gmra.mrb[10].mxu1 %v674_v32  ;;  %v962_v32 = vld [vmem:[#allocation8 + $0x388] sm:$0xff] }
 0x63f   :  { %1430 = vmatprep.mubr.msk.f32.mxu1 %vm1802_vm3, %v1803_v6  ;;  %1621 = vmatpush3.bf16.msra.mxu1 %v1620_v39  ;;  %v1665_v34 = vpack.c.bf16 %v963_v33, %v962_v32 }
 0x640   :  { %1622 = vmatprep.subr.bf16.mxu1 %v1801_v5 }
 0x643   :  { %1624 = vmatpush3.bf16.msra.mxu1 %v1623_v41 }
 0x644   :  { %1625 = vmatprep.subr.bf16.mxu1 %v1801_v5 }
 0x647   :  { %1627 = vmatpush3.bf16.msra.mxu1 %v1626_v44 }
 0x648   :  { %1628 = vmatprep.subr.bf16.mxu1 %v1801_v5 }
 0x64b   :  { %1630 = vmatpush3.bf16.msra.mxu1 %v1629_v47 }
 0x64c   :  { %1631 = vmatprep.subr.bf16.mxu1 %v1801_v5 }
 0x64f   :  { %1633 = vmatpush3.bf16.msra.mxu1 %v1632_v50 }
 0x650   :  { %1634 = vmatprep.subr.bf16.mxu1 %v1801_v5 }
 0x653   :  { %1636 = vmatpush3.bf16.msra.mxu1 %v1635_v53 }
 0x654   :  { %1637 = vmatprep.subr.bf16.mxu1 %v1801_v5 }
 0x657   :  { %1639 = vmatpush3.bf16.msra.mxu1 %v1638_v56 }
 0x658   :  { %1640 = vmatprep.subr.bf16.mxu1 %v1801_v5 }
 0x65b   :  { %1642 = vmatpush3.bf16.msra.mxu1 %v1641_v1 }
 0x711   :  { %v761_v59 = vpop.f32.mrb[10].mxu1 }
 0x712   :  { %v762_v60 = vadd.f32 %v761_v59, %v694_v58  ;;  %v1362_v61 = vpop.f32.mrb[11].mxu1 }
 0x714   :  { %v765_v62 = vmax.f32 %v762_v60, 0.0 }
 0x716   :  { %1396 = vmatmul.mubr.f32.vlgmr.msra.gmra.mrb[4].mxu0 %v765_v62 }
 0x717   :  { %1465 = vmatprep.mubr.msk.f32.mxu0 %vm1802_vm3, %v1803_v6  ;;  %1645 = vmatpush3.bf16.msra.mxu0 %v1644_v7  ;;  %v954_v6 = vld [vmem:[#allocation8 + $0x348] sm:$0xff] }
 0x718   :  { %1646 = vmatprep.subr.bf16.mxu0 %v1801_v5  ;;  %v1653_v14 = vpack.c.bf16 %v955_v13, %v954_v6 }
 0x71b   :  { %1648 = vmatpush3.bf16.msra.mxu0 %v1647_v9 }
 0x71c   :  { %1649 = vmatprep.subr.bf16.mxu0 %v1801_v5 }
 0x71f   :  { %1651 = vmatpush3.bf16.msra.mxu0 %v1650_v12 }
 0x720   :  { %1652 = vmatprep.subr.bf16.mxu0 %v1801_v5 }
 0x723   :  { %1654 = vmatpush3.bf16.msra.mxu0 %v1653_v14 }
 0x724   :  { %1655 = vmatprep.subr.bf16.mxu0 %v1801_v5 }
 0x727   :  { %1657 = vmatpush3.bf16.msra.mxu0 %v1656_v17 }
 0x728   :  { %1658 = vmatprep.subr.bf16.mxu0 %v1801_v5 }
 0x72b   :  { %1660 = vmatpush3.bf16.msra.mxu0 %v1659_v20 }
 0x72c   :  { %1661 = vmatprep.subr.bf16.mxu0 %v1801_v5 }
 0x72f   :  { %1663 = vmatpush3.bf16.msra.mxu0 %v1662_v23 }
 0x730   :  { %1664 = vmatprep.subr.bf16.mxu0 %v1801_v5 }
 0x733   :  { %1666 = vmatpush3.bf16.msra.mxu0 %v1665_v34 }
 0x7e9   :  { %v852_v28 = vpop.f32.mrb[4].mxu0 }
 0x7ea   :  { %v853_v29 = vadd.f32 %v852_v28, %v785_v26  ;;  %v1397_v30 = vpop.f32.mrb[5].mxu0 }
 0x7ec   :  { %v856_v31 = vmax.f32 %v853_v29, 0.0 }
 0x7ee   :  { %1431 = vmatmul.mubr.f32.vlgmr.msra.gmra.mrb[12].mxu1 %v856_v31 }
 0x8c1   :  { %v943_v37 = vpop.f32.mrb[12].mxu1 }
 0x8c2   :  { %v944_v38 = vadd.f32 %v943_v37, %v876_v36  ;;  %v1432_v5 = vpop.f32.mrb[13].mxu1 }
 0x8c4   :  { %v947_v39 = vmax.f32 %v944_v38, 0.0 }
 0x8c6   :  { %1466 = vmatmul.mubr.f32.vlgmr.msra.gmra.mrb[6].mxu0 %v947_v39 }
 0x999   :  { %v1030_v40 = vpop.f32.mrb[6].mxu0 }
 0x99a   :  { %1034 = vst [vmem:[#allocation10] sm:$0xff] %v1030_v40  ;;  %v1467_v41 = vpop.f32.mrb[7].mxu0 }
 0x99b   :  { %1776 = shalt.err (!%p1773_p8)
}
 0x99c   :  { %s1777_s13 = scalar_lea.hbm %s1989_s4, 128 }
 0x99d   :  { %p1778_p9 = scmp.ne.s32.totalorder %s1989_s4, %s1777_s13  ;;  %p1781_p10 = scmp.lt.u32.totalorder %s1777_s13, %s1989_s4 }
 0x99f   :  { %p1783_p11 = pnand %p1781_p10, %p1778_p9 }
 0x9a1   :  { %1786 = shalt.err (!%p1783_p11)
}
 0x9a2   :  { %1044 = dma.vmem_to_hbm [thread:$0]  %s1042_s27, 128, %s1989_s4, [#allocation4]  }
 0x9a3   :  { %1793 = dma.done.wait [#allocation4], 128  }
 0x9a4   :  { %1794 = vsyncadd [#allocation4], 4294967168 }
 0x9a5   :  { %1048 = vsyncpa [#allocation3], 1 }
 0x9a6   :  { %1049 = vsyncpa [#allocation6], 1 }
 0x9a7   :  { %1050 = vsyncpa [#allocation9], 1 }
 0x9a8   :  { %1051 = vsyncpa [#allocation4], 1 }

</bundles_post_ra>
